<compile_context>
chip_gen: v6e
topology: v6e:2x2x1
jax: 0.10.0
libtpu: 0.0.40
codegen_flags: <defaults>
</compile_context>

<pallas_src>
import functools
import math

import jax
import jax.numpy as jnp
from jax.experimental import pallas as pl
from jax.experimental.pallas import tpu as pltpu

BN_EPS = 1e-5


def _dyn_kernel(a,
                xcat_ref, gamma_ref, beta_ref, win_ref, bin_ref,
                wi2o_ref, bi2o_ref, wl2o_ref, bl2o_ref,
                out_ref):
    T, B, _ = xcat_ref.shape
    KP = wl2o_ref.shape[-1]

    # ---------------- Batched, non-recurrent path (all T at once) ----------------
    x = xcat_ref[...]                                        # (T, B, F)

    # BatchNorm1d(I + H_u): training-mode (biased) batch statistics, eps=1e-5.
    mean = jnp.mean(x, axis=1, keepdims=True)
    var = jnp.mean((x - mean) ** 2, axis=1, keepdims=True)
    xbn = (x - mean) * jax.lax.rsqrt(var + BN_EPS)
    xbn = xbn * gamma_ref[...] + beta_ref[...]               # (T, B, F)

    # h_t = relu(fc_ins[t](x_t)) for all t -> one batched MXU matmul.
    h = jnp.einsum('tbf,tfn->tbn', xbn, win_ref[...],
                   preferred_element_type=jnp.float32) + bin_ref[...]
    h = jnp.maximum(h, 0.0)                                  # (T, B, nodes)

    # from_in_t = i2o(h_t) for all t -> batched matmul against broadcast weight
    # (broadcast keeps operands in standard batched form; no in-kernel reshapes).
    wi2o_b = jnp.broadcast_to(wi2o_ref[...][None], (T,) + wi2o_ref.shape)
    from_in = jnp.einsum('tbn,tnk->tbk', h, wi2o_b,
                         preferred_element_type=jnp.float32) + bi2o_ref[...]  # (T, B, KP)

    # ---------------- Serial gated recurrence (only l2o depends on `last`) -------
    wl2o = wl2o_ref[...]                                     # (KP, KP), lane-dense
    bl2o = bl2o_ref[...]                                     # (1, KP)
    last = jnp.zeros((B, KP), jnp.float32)
    for t in range(T):                                       # static unroll; T is small
        from_last = jnp.dot(last, wl2o,
                            preferred_element_type=jnp.float32) + bl2o
        new = jnp.maximum(from_in[t] + from_last, 0.0)
        if a != 1.0:                                         # trace-time specialization
            new = a * new + (1.0 - a) * from_last
        out_ref[t] = new                                     # resident (T, B, KP) slab
        last = new


def dynamic_model_forward(params, x_i, z_u, z_v, input_t, a=1.0):
    """Pallas implementation of DynamicModel.forward.

    Returns (out_seq, v_relu): out_seq is the stacked (input_t, B, K) hidden states
    (out_seq[t] == output_list[t] of the PyTorch module); v_relu = relu(v_i).
    z_v is unused, matching the PyTorch forward.
    """
    del z_v
    B, _, I = x_i.shape
    H_u = z_u.shape[1]
    F = I + H_u
    nodes, K = params["w_i2o"].shape
    KP = ((K + 127) // 128) * 128            # pad state/output width to 128 lanes

    f32 = jnp.float32
    # glue: time-major slice + concat of the (time-invariant) z_u features
    x_t = jnp.transpose(x_i[:, :input_t], (1, 0, 2)).astype(f32)           # (T, B, I)
    z_b = jnp.broadcast_to(z_u.astype(f32)[None], (input_t, B, H_u))
    x_cat = jnp.concatenate([x_t, z_b], axis=-1)                           # (T, B, F)

    gamma = params["bn_gamma"][:input_t][:, None, :].astype(f32)           # (T, 1, F)
    beta = params["bn_beta"][:input_t][:, None, :].astype(f32)             # (T, 1, F)
    w_in = params["w_in"][:input_t].astype(f32)                            # (T, F, nodes)
    b_in = params["b_in"][:input_t][:, None, :].astype(f32)                # (T, 1, nodes)

    # Zero-pad the K-sized parameters to KP lanes (exact: padded columns stay 0).
    w_i2o = jnp.pad(params["w_i2o"].astype(f32), [(0, 0), (0, KP - K)])    # (nodes, KP)
    b_i2o = jnp.pad(params["b_i2o"].astype(f32), [(0, KP - K)])[None, None, :]   # (1,1,KP)
    w_l2o = jnp.pad(params["w_l2o"].astype(f32),
                    [(0, KP - K), (0, KP - K)])                            # (KP, KP)
    b_l2o = jnp.pad(params["b_l2o"].astype(f32), [(0, KP - K)])[None, :]   # (1, KP)

    kernel = functools.partial(_dyn_kernel, float(a))

    flops = 2 * input_t * B * (F * nodes + nodes * KP + KP * KP)
    bytes_accessed = 4 * int(x_cat.size + gamma.size + beta.size + w_in.size
                             + b_in.size + w_i2o.size + b_i2o.size + w_l2o.size
                             + b_l2o.size + input_t * B * KP)

    # Single invocation: everything (well under 1 MiB at these shapes) is
    # VMEM-resident, one output DMA at the end.
    # TODO(synk): for large T / nodes, chunk the time axis with a real grid and
    # re-size resident blocks against v7x's 64 MiB VMEM (vs 128 MiB on v5e/v6e).
    out_pad = pl.pallas_call(
        kernel,
        out_shape=jax.ShapeDtypeStruct((input_t, B, KP), f32),
        grid=(1,),
        in_specs=[
            pl.BlockSpec((input_t, B, F), lambda i: (0, 0, 0)),       # x_cat
            pl.BlockSpec((input_t, 1, F), lambda i: (0, 0, 0)),       # bn gamma
            pl.BlockSpec((input_t, 1, F), lambda i: (0, 0, 0)),       # bn beta
            pl.BlockSpec((input_t, F, nodes), lambda i: (0, 0, 0)),   # fc_ins weights
            pl.BlockSpec((input_t, 1, nodes), lambda i: (0, 0, 0)),   # fc_ins biases
            pl.BlockSpec((nodes, KP), lambda i: (0, 0)),              # i2o weight (padded)
            pl.BlockSpec((1, 1, KP), lambda i: (0, 0, 0)),            # i2o bias (padded)
            pl.BlockSpec((KP, KP), lambda i: (0, 0)),                 # l2o weight (padded)
            pl.BlockSpec((1, KP), lambda i: (0, 0)),                  # l2o bias (padded)
        ],
        out_specs=pl.BlockSpec((input_t, B, KP), lambda i: (0, 0, 0)),
        compiler_params=pltpu.CompilerParams(dimension_semantics=("arbitrary",)),
        cost_estimate=pl.CostEstimate(flops=flops,
                                      transcendentals=input_t * F,
                                      bytes_accessed=bytes_accessed),
    )(x_cat, gamma, beta, w_in, b_in, w_i2o, b_i2o, w_l2o, b_l2o)

    out_seq = out_pad[..., :K]                                             # (T, B, K)
    v_relu = jnp.maximum(params["v_i"].astype(f32), 0.0)                   # relu(v_i), no recurrence dep
    return out_seq, v_relu


def _reference_forward(params, x_i, z_u, input_t, a=1.0):
    """Pure-JAX reference mirroring the PyTorch forward (for validation only)."""
    B = x_i.shape[0]
    K = params["w_i2o"].shape[1]
    last = jnp.zeros((B, K), jnp.float32)
    outs = []
    for t in range(input_t):
        x = jnp.concatenate([x_i[:, t], z_u], axis=1)
        mean = jnp.mean(x, axis=0, keepdims=True)
        var = jnp.mean((x - mean) ** 2, axis=0, keepdims=True)
        x = (x - mean) / jnp.sqrt(var + BN_EPS)
        x = x * params["bn_gamma"][t] + params["bn_beta"][t]
        x = jnp.maximum(x @ params["w_in"][t] + params["b_in"][t], 0.0)
        from_in = x @ params["w_i2o"] + params["b_i2o"]
        from_last = last @ params["w_l2o"] + params["b_l2o"]
        last = a * jnp.maximum(from_in + from_last, 0.0) + (1 - a) * from_last
        outs.append(last)
    return outs, jnp.maximum(params["v_i"], 0.0)


def init_params(key, T, I, K, H_u, nodes):
    """Deterministic synthetic init (kaiming-style uniform bounds); not a checkpoint load."""
    ks = jax.random.split(key, 8)
    F = I + H_u

    def unif(k, shape, fan_in):
        bound = math.sqrt(1.0 / fan_in)
        return jax.random.uniform(k, shape, jnp.float32, -bound, bound)

    return {
        "v_i": unif(ks[0], (K, I), I),
        "w_in": unif(ks[1], (T, F, nodes), F),     # fc_ins weights, stored (in, out)
        "b_in": unif(ks[2], (T, nodes), F),
        "w_i2o": unif(ks[3], (nodes, K), nodes),
        "b_i2o": unif(ks[4], (K,), nodes),
        "w_l2o": unif(ks[5], (K, K), K),
        "b_l2o": unif(ks[6], (K,), K),
        "bn_gamma": jnp.ones((T, F), jnp.float32),
        "bn_beta": jnp.zeros((T, F), jnp.float32),
        # TODO(synk): fc_u_z / fc_v_z / input_bn / input_bn_v are declared in __init__
        # but never used in forward(); omitted here.
    }


if __name__ == "__main__":
    # Small shapes consistent with the module.
    T, I, K, H_u, H_v, nodes = 4, 16, 10, 5, 5, 64
    B = 2

    key = jax.random.PRNGKey(0)
    kp, kx, kz, kv = jax.random.split(key, 4)
    params = init_params(kp, T, I, K, H_u, nodes)

    x_i = jax.random.normal(kx, (B, T, I), jnp.float32)
    z_u = jax.random.normal(kz, (B, H_u), jnp.float32)
    z_v = jax.random.normal(kv, (B, H_v), jnp.float32)   # unused, as in PyTorch forward

    # a == 1.0 (specialized trace-time path)
    out_seq, v_relu = dynamic_model_forward(params, x_i, z_u, z_v, input_t=T, a=1.0)
    jax.block_until_ready(out_seq)
    jax.block_until_ready(v_relu)

    ref_outs, ref_v = _reference_forward(params, x_i, z_u, T, a=1.0)
    for t in range(T):
        assert jnp.allclose(out_seq[t], ref_outs[t], atol=1e-4, rtol=1e-4), f"mismatch at t={t}"
    assert jnp.allclose(v_relu, ref_v, atol=1e-5, rtol=1e-5)

    # a != 1.0 (general gated-update path)
    out_seq2, _ = dynamic_model_forward(params, x_i, z_u, z_v, input_t=T, a=0.7)
    jax.block_until_ready(out_seq2)
    ref_outs2, _ = _reference_forward(params, x_i, z_u, T, a=0.7)
    for t in range(T):
        assert jnp.allclose(out_seq2[t], ref_outs2[t], atol=1e-4, rtol=1e-4), f"a=0.7 mismatch at t={t}"

    print("KERNEL_OK")
</pallas_src>

<mosaic_0001>
module attributes {stable_mosaic.version = 11 : i64} {
  func.func @_dyn_kernel(%arg0: i32, %arg1: memref<4x2x21xf32, #tpu.memory_space<vmem>>, %arg2: memref<4x1x21xf32, #tpu.memory_space<vmem>>, %arg3: memref<4x1x21xf32, #tpu.memory_space<vmem>>, %arg4: memref<4x21x64xf32, #tpu.memory_space<vmem>>, %arg5: memref<4x1x64xf32, #tpu.memory_space<vmem>>, %arg6: memref<64x128xf32, #tpu.memory_space<vmem>>, %arg7: memref<1x1x128xf32, #tpu.memory_space<vmem>>, %arg8: memref<128x128xf32, #tpu.memory_space<vmem>>, %arg9: memref<1x128xf32, #tpu.memory_space<vmem>>, %arg10: memref<4x2x128xf32, #tpu.memory_space<vmem>>) attributes {dimension_semantics = [#tpu.dimension_semantics<arbitrary>], iteration_bounds = array<i64: 1>, scalar_prefetch = 0 : i64, scratch_operands = 0 : i64, tpu.core_type = #tpu.core_type<tc>, window_params = [{pipeline_mode = #tpu.pipeline_mode<synchronous>, transform_indices = @transform_0, window_bounds = array<i64: 4, 2, 21>}, {pipeline_mode = #tpu.pipeline_mode<synchronous>, transform_indices = @transform_1, window_bounds = array<i64: 4, 1, 21>}, {pipeline_mode = #tpu.pipeline_mode<synchronous>, transform_indices = @transform_2, window_bounds = array<i64: 4, 1, 21>}, {pipeline_mode = #tpu.pipeline_mode<synchronous>, transform_indices = @transform_3, window_bounds = array<i64: 4, 21, 64>}, {pipeline_mode = #tpu.pipeline_mode<synchronous>, transform_indices = @transform_4, window_bounds = array<i64: 4, 1, 64>}, {pipeline_mode = #tpu.pipeline_mode<synchronous>, transform_indices = @transform_5, window_bounds = array<i64: 64, 128>}, {pipeline_mode = #tpu.pipeline_mode<synchronous>, transform_indices = @transform_6, window_bounds = array<i64: 1, 1, 128>}, {pipeline_mode = #tpu.pipeline_mode<synchronous>, transform_indices = @transform_7, window_bounds = array<i64: 128, 128>}, {pipeline_mode = #tpu.pipeline_mode<synchronous>, transform_indices = @transform_8, window_bounds = array<i64: 1, 128>}, {pipeline_mode = #tpu.pipeline_mode<synchronous>, transform_indices = @transform_9, window_bounds = array<i64: 4, 2, 128>}]} {
    %c0 = arith.constant 0 : index
    %c0_0 = arith.constant 0 : index
    %c0_1 = arith.constant 0 : index
    %0 = vector.load %arg1[%c0, %c0_0, %c0_1] : memref<4x2x21xf32, #tpu.memory_space<vmem>>, vector<4x2x21xf32>
    %cst = arith.constant dense<0.000000e+00> : vector<4x21xf32>
    %1 = vector.multi_reduction <add>, %0, %cst [1] : vector<4x2x21xf32> to vector<4x21xf32>
    %2 = vector.shape_cast %1 : vector<4x21xf32> to vector<4x1x21xf32>
    %cst_2 = arith.constant 2.000000e+00 : f32
    %3 = vector.broadcast %cst_2 : f32 to vector<4x1x21xf32>
    %4 = arith.divf %2, %3 : vector<4x1x21xf32>
    %5 = vector.broadcast %4 : vector<4x1x21xf32> to vector<4x2x21xf32>
    %6 = arith.subf %0, %5 : vector<4x2x21xf32>
    %7 = arith.mulf %6, %6 : vector<4x2x21xf32>
    %cst_3 = arith.constant dense<0.000000e+00> : vector<4x21xf32>
    %8 = vector.multi_reduction <add>, %7, %cst_3 [1] : vector<4x2x21xf32> to vector<4x21xf32>
    %9 = vector.shape_cast %8 : vector<4x21xf32> to vector<4x1x21xf32>
    %cst_4 = arith.constant 2.000000e+00 : f32
    %10 = vector.broadcast %cst_4 : f32 to vector<4x1x21xf32>
    %11 = arith.divf %9, %10 : vector<4x1x21xf32>
    %12 = vector.broadcast %4 : vector<4x1x21xf32> to vector<4x2x21xf32>
    %13 = arith.subf %0, %12 : vector<4x2x21xf32>
    %cst_5 = arith.constant 9.99999974E-6 : f32
    %14 = vector.broadcast %cst_5 : f32 to vector<4x1x21xf32>
    %15 = arith.addf %11, %14 : vector<4x1x21xf32>
    %16 = math.rsqrt %15 : vector<4x1x21xf32>
    %17 = vector.broadcast %16 : vector<4x1x21xf32> to vector<4x2x21xf32>
    %18 = arith.mulf %13, %17 : vector<4x2x21xf32>
    %c0_6 = arith.constant 0 : index
    %c0_7 = arith.constant 0 : index
    %c0_8 = arith.constant 0 : index
    %19 = vector.load %arg2[%c0_6, %c0_7, %c0_8] : memref<4x1x21xf32, #tpu.memory_space<vmem>>, vector<4x1x21xf32>
    %20 = vector.broadcast %19 : vector<4x1x21xf32> to vector<4x2x21xf32>
    %21 = arith.mulf %18, %20 : vector<4x2x21xf32>
    %c0_9 = arith.constant 0 : index
    %c0_10 = arith.constant 0 : index
    %c0_11 = arith.constant 0 : index
    %22 = vector.load %arg3[%c0_9, %c0_10, %c0_11] : memref<4x1x21xf32, #tpu.memory_space<vmem>>, vector<4x1x21xf32>
    %23 = vector.broadcast %22 : vector<4x1x21xf32> to vector<4x2x21xf32>
    %24 = arith.addf %21, %23 : vector<4x2x21xf32>
    %c0_12 = arith.constant 0 : index
    %c0_13 = arith.constant 0 : index
    %c0_14 = arith.constant 0 : index
    %25 = vector.load %arg4[%c0_12, %c0_13, %c0_14] : memref<4x21x64xf32, #tpu.memory_space<vmem>>, vector<4x21x64xf32>
    "tpu.trace_start"() <{level = 10 : i32, message = "tbf,tfn->tbn"}> : () -> ()
    %cst_15 = arith.constant dense<0.000000e+00> : vector<4x2x64xf32>
    %26 = tpu.matmul %24, %25, %cst_15 {dimension_numbers = #tpu.dot_dimension_numbers<[2], [1], [1], [2], [0, 0, 0, 1, 1, 2], [0], [0]>} : vector<4x2x21xf32>, vector<4x21x64xf32>, vector<4x2x64xf32> -> vector<4x2x64xf32>
    "tpu.trace_stop"() : () -> ()
    %c0_16 = arith.constant 0 : index
    %c0_17 = arith.constant 0 : index
    %c0_18 = arith.constant 0 : index
    %27 = vector.load %arg5[%c0_16, %c0_17, %c0_18] : memref<4x1x64xf32, #tpu.memory_space<vmem>>, vector<4x1x64xf32>
    %28 = vector.broadcast %27 : vector<4x1x64xf32> to vector<4x2x64xf32>
    %29 = arith.addf %26, %28 : vector<4x2x64xf32>
    %cst_19 = arith.constant 0.000000e+00 : f32
    %30 = vector.broadcast %cst_19 : f32 to vector<4x2x64xf32>
    %31 = arith.maximumf %29, %30 : vector<4x2x64xf32>
    %c0_20 = arith.constant 0 : index
    %c0_21 = arith.constant 0 : index
    %32 = vector.load %arg6[%c0_20, %c0_21] : memref<64x128xf32, #tpu.memory_space<vmem>>, vector<64x128xf32>
    %33 = vector.shape_cast %32 : vector<64x128xf32> to vector<1x64x128xf32>
    %34 = vector.shape_cast %33 : vector<1x64x128xf32> to vector<1x64x128xf32>
    %35 = vector.broadcast %34 : vector<1x64x128xf32> to vector<4x64x128xf32>
    "tpu.trace_start"() <{level = 10 : i32, message = "tbn,tnk->tbk"}> : () -> ()
    %cst_22 = arith.constant dense<0.000000e+00> : vector<4x2x128xf32>
    %36 = tpu.matmul %31, %35, %cst_22 {dimension_numbers = #tpu.dot_dimension_numbers<[2], [1], [1], [2], [0, 0, 0, 1, 1, 2], [0], [0]>} : vector<4x2x64xf32>, vector<4x64x128xf32>, vector<4x2x128xf32> -> vector<4x2x128xf32>
    "tpu.trace_stop"() : () -> ()
    %c0_23 = arith.constant 0 : index
    %c0_24 = arith.constant 0 : index
    %c0_25 = arith.constant 0 : index
    %37 = vector.load %arg7[%c0_23, %c0_24, %c0_25] : memref<1x1x128xf32, #tpu.memory_space<vmem>>, vector<1x1x128xf32>
    %38 = vector.broadcast %37 : vector<1x1x128xf32> to vector<4x2x128xf32>
    %39 = arith.addf %36, %38 : vector<4x2x128xf32>
    %c0_26 = arith.constant 0 : index
    %c0_27 = arith.constant 0 : index
    %40 = vector.load %arg8[%c0_26, %c0_27] : memref<128x128xf32, #tpu.memory_space<vmem>>, vector<128x128xf32>
    %c0_28 = arith.constant 0 : index
    %c0_29 = arith.constant 0 : index
    %41 = vector.load %arg9[%c0_28, %c0_29] : memref<1x128xf32, #tpu.memory_space<vmem>>, vector<1x128xf32>
    %cst_30 = arith.constant 0.000000e+00 : f32
    %42 = vector.broadcast %cst_30 : f32 to vector<2x128xf32>
    %cst_31 = arith.constant dense<0.000000e+00> : vector<2x128xf32>
    %43 = tpu.matmul %42, %40, %cst_31 {dimension_numbers = #tpu.dot_dimension_numbers<[1], [0], [0], [1], [0, 0, 1, 1], [], []>} : vector<2x128xf32>, vector<128x128xf32>, vector<2x128xf32> -> vector<2x128xf32>
    %44 = vector.broadcast %41 : vector<1x128xf32> to vector<2x128xf32>
    %45 = arith.addf %43, %44 : vector<2x128xf32>
    %46 = vector.extract_strided_slice %39 {offsets = [0, 0, 0], sizes = [1, 2, 128], strides = [1, 1, 1]} : vector<4x2x128xf32> to vector<1x2x128xf32>
    %47 = vector.shape_cast %46 : vector<1x2x128xf32> to vector<2x128xf32>
    %48 = arith.addf %47, %45 : vector<2x128xf32>
    %cst_32 = arith.constant 0.000000e+00 : f32
    %49 = vector.broadcast %cst_32 : f32 to vector<2x128xf32>
    %50 = arith.maximumf %48, %49 : vector<2x128xf32>
    %c0_33 = arith.constant 0 : index
    %c0_34 = arith.constant 0 : index
    %c0_35 = arith.constant 0 : index
    %51 = vector.load %arg10[%c0_33, %c0_34, %c0_35] : memref<4x2x128xf32, #tpu.memory_space<vmem>>, vector<1x2x128xf32>
    %52 = vector.shape_cast %51 : vector<1x2x128xf32> to vector<2x128xf32>
    %53 = vector.shape_cast %50 : vector<2x128xf32> to vector<1x2x128xf32>
    tpu.vector_store %arg10[%c0_33, %c0_34, %c0_35], %53 {strides = array<i32>} : memref<4x2x128xf32, #tpu.memory_space<vmem>>, vector<1x2x128xf32>,
    %cst_36 = arith.constant dense<0.000000e+00> : vector<2x128xf32>
    %54 = tpu.matmul %50, %40, %cst_36 {dimension_numbers = #tpu.dot_dimension_numbers<[1], [0], [0], [1], [0, 0, 1, 1], [], []>} : vector<2x128xf32>, vector<128x128xf32>, vector<2x128xf32> -> vector<2x128xf32>
    %55 = vector.broadcast %41 : vector<1x128xf32> to vector<2x128xf32>
    %56 = arith.addf %54, %55 : vector<2x128xf32>
    %57 = vector.extract_strided_slice %39 {offsets = [1, 0, 0], sizes = [1, 2, 128], strides = [1, 1, 1]} : vector<4x2x128xf32> to vector<1x2x128xf32>
    %58 = vector.shape_cast %57 : vector<1x2x128xf32> to vector<2x128xf32>
    %59 = arith.addf %58, %56 : vector<2x128xf32>
    %cst_37 = arith.constant 0.000000e+00 : f32
    %60 = vector.broadcast %cst_37 : f32 to vector<2x128xf32>
    %61 = arith.maximumf %59, %60 : vector<2x128xf32>
    %c1 = arith.constant 1 : index
    %c0_38 = arith.constant 0 : index
    %c0_39 = arith.constant 0 : index
    %62 = vector.load %arg10[%c1, %c0_38, %c0_39] : memref<4x2x128xf32, #tpu.memory_space<vmem>>, vector<1x2x128xf32>
    %63 = vector.shape_cast %62 : vector<1x2x128xf32> to vector<2x128xf32>
    %64 = vector.shape_cast %61 : vector<2x128xf32> to vector<1x2x128xf32>
    tpu.vector_store %arg10[%c1, %c0_38, %c0_39], %64 {strides = array<i32>} : memref<4x2x128xf32, #tpu.memory_space<vmem>>, vector<1x2x128xf32>,
    %cst_40 = arith.constant dense<0.000000e+00> : vector<2x128xf32>
    %65 = tpu.matmul %61, %40, %cst_40 {dimension_numbers = #tpu.dot_dimension_numbers<[1], [0], [0], [1], [0, 0, 1, 1], [], []>} : vector<2x128xf32>, vector<128x128xf32>, vector<2x128xf32> -> vector<2x128xf32>
    %66 = vector.broadcast %41 : vector<1x128xf32> to vector<2x128xf32>
    %67 = arith.addf %65, %66 : vector<2x128xf32>
    %68 = vector.extract_strided_slice %39 {offsets = [2, 0, 0], sizes = [1, 2, 128], strides = [1, 1, 1]} : vector<4x2x128xf32> to vector<1x2x128xf32>
    %69 = vector.shape_cast %68 : vector<1x2x128xf32> to vector<2x128xf32>
    %70 = arith.addf %69, %67 : vector<2x128xf32>
    %cst_41 = arith.constant 0.000000e+00 : f32
    %71 = vector.broadcast %cst_41 : f32 to vector<2x128xf32>
    %72 = arith.maximumf %70, %71 : vector<2x128xf32>
    %c2 = arith.constant 2 : index
    %c0_42 = arith.constant 0 : index
    %c0_43 = arith.constant 0 : index
    %73 = vector.load %arg10[%c2, %c0_42, %c0_43] : memref<4x2x128xf32, #tpu.memory_space<vmem>>, vector<1x2x128xf32>
    %74 = vector.shape_cast %73 : vector<1x2x128xf32> to vector<2x128xf32>
    %75 = vector.shape_cast %72 : vector<2x128xf32> to vector<1x2x128xf32>
    tpu.vector_store %arg10[%c2, %c0_42, %c0_43], %75 {strides = array<i32>} : memref<4x2x128xf32, #tpu.memory_space<vmem>>, vector<1x2x128xf32>,
    %cst_44 = arith.constant dense<0.000000e+00> : vector<2x128xf32>
    %76 = tpu.matmul %72, %40, %cst_44 {dimension_numbers = #tpu.dot_dimension_numbers<[1], [0], [0], [1], [0, 0, 1, 1], [], []>} : vector<2x128xf32>, vector<128x128xf32>, vector<2x128xf32> -> vector<2x128xf32>
    %77 = vector.broadcast %41 : vector<1x128xf32> to vector<2x128xf32>
    %78 = arith.addf %76, %77 : vector<2x128xf32>
    %79 = vector.extract_strided_slice %39 {offsets = [3, 0, 0], sizes = [1, 2, 128], strides = [1, 1, 1]} : vector<4x2x128xf32> to vector<1x2x128xf32>
    %80 = vector.shape_cast %79 : vector<1x2x128xf32> to vector<2x128xf32>
    %81 = arith.addf %80, %78 : vector<2x128xf32>
    %cst_45 = arith.constant 0.000000e+00 : f32
    %82 = vector.broadcast %cst_45 : f32 to vector<2x128xf32>
    %83 = arith.maximumf %81, %82 : vector<2x128xf32>
    %c3 = arith.constant 3 : index
    %c0_46 = arith.constant 0 : index
    %c0_47 = arith.constant 0 : index
    %84 = vector.load %arg10[%c3, %c0_46, %c0_47] : memref<4x2x128xf32, #tpu.memory_space<vmem>>, vector<1x2x128xf32>
    %85 = vector.shape_cast %84 : vector<1x2x128xf32> to vector<2x128xf32>
    %86 = vector.shape_cast %83 : vector<2x128xf32> to vector<1x2x128xf32>
    tpu.vector_store %arg10[%c3, %c0_46, %c0_47], %86 {strides = array<i32>} : memref<4x2x128xf32, #tpu.memory_space<vmem>>, vector<1x2x128xf32>,
    return
  }
  func.func @transform_0(%arg0: i32) -> (i32, i32, i32) {
    %c0_i32 = arith.constant 0 : i32
    %c0_i32_0 = arith.constant 0 : i32
    %c0_i32_1 = arith.constant 0 : i32
    %c0_i32_2 = arith.constant 0 : i32
    return %c0_i32, %c0_i32_0, %c0_i32_1 : i32, i32, i32
  }
  func.func @transform_1(%arg0: i32) -> (i32, i32, i32) {
    %c0_i32 = arith.constant 0 : i32
    %c0_i32_0 = arith.constant 0 : i32
    %c0_i32_1 = arith.constant 0 : i32
    %c0_i32_2 = arith.constant 0 : i32
    return %c0_i32, %c0_i32_0, %c0_i32_1 : i32, i32, i32
  }
  func.func @transform_2(%arg0: i32) -> (i32, i32, i32) {
    %c0_i32 = arith.constant 0 : i32
    %c0_i32_0 = arith.constant 0 : i32
    %c0_i32_1 = arith.constant 0 : i32
    %c0_i32_2 = arith.constant 0 : i32
    return %c0_i32, %c0_i32_0, %c0_i32_1 : i32, i32, i32
  }
  func.func @transform_3(%arg0: i32) -> (i32, i32, i32) {
    %c0_i32 = arith.constant 0 : i32
    %c0_i32_0 = arith.constant 0 : i32
    %c0_i32_1 = arith.constant 0 : i32
    %c0_i32_2 = arith.constant 0 : i32
    return %c0_i32, %c0_i32_0, %c0_i32_1 : i32, i32, i32
  }
  func.func @transform_4(%arg0: i32) -> (i32, i32, i32) {
    %c0_i32 = arith.constant 0 : i32
    %c0_i32_0 = arith.constant 0 : i32
    %c0_i32_1 = arith.constant 0 : i32
    %c0_i32_2 = arith.constant 0 : i32
    return %c0_i32, %c0_i32_0, %c0_i32_1 : i32, i32, i32
  }
  func.func @transform_5(%arg0: i32) -> (i32, i32) {
    %c0_i32 = arith.constant 0 : i32
    %c0_i32_0 = arith.constant 0 : i32
    %c0_i32_1 = arith.constant 0 : i32
    return %c0_i32, %c0_i32_0 : i32, i32
  }
  func.func @transform_6(%arg0: i32) -> (i32, i32, i32) {
    %c0_i32 = arith.constant 0 : i32
    %c0_i32_0 = arith.constant 0 : i32
    %c0_i32_1 = arith.constant 0 : i32
    %c0_i32_2 = arith.constant 0 : i32
    return %c0_i32, %c0_i32_0, %c0_i32_1 : i32, i32, i32
  }
  func.func @transform_7(%arg0: i32) -> (i32, i32) {
    %c0_i32 = arith.constant 0 : i32
    %c0_i32_0 = arith.constant 0 : i32
    %c0_i32_1 = arith.constant 0 : i32
    return %c0_i32, %c0_i32_0 : i32, i32
  }
  func.func @transform_8(%arg0: i32) -> (i32, i32) {
    %c0_i32 = arith.constant 0 : i32
    %c0_i32_0 = arith.constant 0 : i32
    %c0_i32_1 = arith.constant 0 : i32
    return %c0_i32, %c0_i32_0 : i32, i32
  }
  func.func @transform_9(%arg0: i32) -> (i32, i32, i32) {
    %c0_i32 = arith.constant 0 : i32
    %c0_i32_0 = arith.constant 0 : i32
    %c0_i32_1 = arith.constant 0 : i32
    %c0_i32_2 = arith.constant 0 : i32
    return %c0_i32, %c0_i32_0, %c0_i32_1 : i32, i32, i32
  }
}

</mosaic_0001>

<bundles_post_ra>
// kernel: tpu_custom_call.1
= control target key start
LH: loop header
LB: loop body
LE: loop exit
PB: predicated region body
PF: predicated region fallthrough
CT: control target
= control target key end

     0   :  { %14 = vsyncpa [#allocation3], 0  ;;  %s2309_s0 = inlined_call_operand.hbm [shape: f32[4,2,21], index: 0, kind: input, shape index: {}]   ;;  %s2310_s1 = inlined_call_operand.hbm [shape: f32[4,1,21], index: 1, kind: input, shape index: {}]   ;;  %s2311_s2 = inlined_call_operand.hbm [shape: f32[4,1,21], index: 2, kind: input, shape index: {}]   ;;  %s2312_s3 = inlined_call_operand.vmem [shape: f32[4,21,64], index: 3, kind: input, shape index: {}]   ;;  %s2313_s4 = inlined_call_operand.hbm [shape: f32[4,1,64], index: 4, kind: input, shape index: {}]   ;;  %s2314_s5 = inlined_call_operand.vmem [shape: f32[64,128], index: 5, kind: input, shape index: {}]   ;;  %s2315_s6 = inlined_call_operand.hbm [shape: f32[1,1,128], index: 6, kind: input, shape index: {}]   ;;  %s2316_s7 = inlined_call_operand.vmem [shape: f32[128,128], index: 7, kind: input, shape index: {}]   ;;  %s2317_s8 = inlined_call_operand.vmem [shape: f32[1,128], index: 8, kind: input, shape index: {}]   ;;  %s2318_s9 = inlined_call_operand.hbm [shape: f32[4,2,128], index: 9, kind: output, shape index: {}]  }
   0x1   :  { %15 = vsyncpa [#allocation6], 0 }
   0x2   :  { %16 = vsyncpa [#allocation9], 0 }
   0x3   :  { %17 = vsyncpa [#allocation4], 0  ;;  %s1794_s30 = smov [#allocation5]  }
   0x4   :  { %s35_s10 = sshll.u32 %s1794_s30, 4  ;;  %s36_s10 = int_to_ptr.vmem [resolvable:$true] %s35_s10 }
   0x5   :  { %s1674_s11 = scalar_lea.vmem %s36_s10, 64  ;;  %p1679_p1 = scmp.lt.s32.totalorder %s36_s10, %s36_s10 }
   0x6   :  { %p1675_p0 = scmp.ne.s32.totalorder %s36_s10, %s1674_s11  ;;  %p1680_p2 = scmp.lt.s32.totalorder %s1674_s11, %s1674_s11 }
   0x8   :  { %p1681_p3 = por %p1680_p2, %p1679_p1 }
   0xa   :  { %p1682_p4 = pnand %p1681_p3, %p1675_p0 }
   0xc   :  { %1685 = shalt.err (!%p1682_p4)
}
   0xd   :  { %s1795_s12 = smov 16   ;;  %s1796_s13 = smov 1  }
   0xe   :  { %41 = dma.hbm_to_vmem [thread:$0]  %s2310_s1, 64, %s36_s10, [#allocation6], %s1795_s12, %s1795_s12, %s1796_s13  }
   0xf   :  { %s1797_s16 = smov [#allocation8]   ;;  %s1798_s18 = smov [#allocation2]  }
  0x10   :  { %s61_s17 = sshll.u32 %s1797_s16, 4  ;;  %s23_s19 = sshll.u32 %s1798_s18, 4  ;;  %s62_s17 = int_to_ptr.vmem [resolvable:$true] %s61_s17  ;;  %s24_s19 = int_to_ptr.vmem [resolvable:$true] %s23_s19 }
  0x11   :  { %s1694_s20 = scalar_lea.vmem %s62_s17, 64  ;;  %p1699_p6 = scmp.lt.s32.totalorder %s62_s17, %s62_s17 }
  0x12   :  { %p1695_p5 = scmp.ne.s32.totalorder %s62_s17, %s1694_s20  ;;  %p1700_p7 = scmp.lt.s32.totalorder %s1694_s20, %s1694_s20 }
  0x14   :  { %p1701_p8 = por %p1700_p7, %p1699_p6 }
  0x16   :  { %p1702_p9 = pnand %p1701_p8, %p1695_p5 }
  0x18   :  { %1705 = shalt.err (!%p1702_p9)
}
  0x19   :  { %67 = dma.hbm_to_vmem [thread:$0]  %s2313_s4, 64, %s62_s17, [#allocation9], %s1795_s12, %s1795_s12, %s1796_s13  }
  0x1a   :  { %s1714_s1 = scalar_lea.vmem %s24_s19, 128  ;;  %p1719_p11 = scmp.lt.s32.totalorder %s24_s19, %s24_s19 }
  0x1b   :  { %p1715_p10 = scmp.ne.s32.totalorder %s24_s19, %s1714_s1  ;;  %p1720_p12 = scmp.lt.s32.totalorder %s1714_s1, %s1714_s1 }
  0x1d   :  { %p1721_p13 = por %p1720_p12, %p1719_p11 }
  0x1f   :  { %p1722_p0 = pnand %p1721_p13, %p1715_p10 }
  0x21   :  { %1725 = shalt.err (!%p1722_p0)
}
  0x22   :  { %s1799_s23 = smov 32   ;;  %s1800_s24 = smov 2  }
  0x23   :  { %29 = dma.hbm_to_vmem [thread:$0]  %s2309_s0, 128, %s24_s19, [#allocation3], %s1799_s23, %s1799_s23, %s1800_s24  }
  0x24   :  { %s1801_s27 = smov [#allocation7]   ;;  %s1802_s4 = smov [#allocation10]  }
  0x25   :  { %s47_s28 = sshll.u32 %s1801_s27, 4  ;;  %s76_s29 = sshll.u32 %s1802_s4, 4  ;;  %s48_s28 = int_to_ptr.vmem [resolvable:$true] %s47_s28  ;;  %s77_s29 = int_to_ptr.vmem [resolvable:$true] %s76_s29 }
  0x26   :  { %s1734_s30 = scalar_lea.vmem %s48_s28, 64  ;;  %p1739_p2 = scmp.lt.s32.totalorder %s48_s28, %s48_s28 }
  0x27   :  { %p1735_p1 = scmp.ne.s32.totalorder %s48_s28, %s1734_s30  ;;  %p1740_p3 = scmp.lt.s32.totalorder %s1734_s30, %s1734_s30 }
  0x29   :  { %p1741_p4 = por %p1740_p3, %p1739_p2 }
  0x2b   :  { %p1742_p5 = pnand %p1741_p4, %p1735_p1 }
  0x2d   :  { %1745 = shalt.err (!%p1742_p5)
}
  0x2e   :  { %53 = dma.hbm_to_vmem [thread:$0]  %s2311_s2, 64, %s48_s28, [#allocation6], %s1795_s12, %s1795_s12, %s1796_s13  }
  0x2f   :  { %s1754_s0 = scalar_lea.vmem %s77_s29, 16  ;;  %s1758_s14 = scalar_lea.vmem %s77_s29, 32 }
  0x30   :  { %p1755_p6 = scmp.ne.s32.totalorder %s77_s29, %s1754_s0  ;;  %p1759_p7 = scmp.lt.s32.totalorder %s77_s29, %s77_s29 }
  0x31   :  { %p1760_p8 = scmp.lt.s32.totalorder %s1758_s14, %s1754_s0 }
  0x33   :  { %p1761_p9 = por %p1760_p8, %p1759_p7 }
  0x35   :  { %p1762_p10 = pnand %p1761_p9, %p1755_p6 }
  0x37   :  { %1765 = shalt.err (!%p1762_p10)
}
  0x38   :  { %79 = dma.hbm_to_vmem [thread:$0]  %s2315_s6, 16, %s77_s29, [#allocation9]  }
  0x39   :  { %1786 = dma.done.wait [#allocation3], 128  }
  0x3a   :  { %1787 = vsyncadd [#allocation3], 4294967168 }
  0x3b   :  { %1788 = dma.done.wait [#allocation6], 128  }
  0x3c   :  { %1789 = vsyncadd [#allocation6], 4294967168 }
  0x3d   :  { %1790 = dma.done.wait [#allocation9], 80  }
  0x3e   :  { %1791 = vsyncadd [#allocation9], 4294967216  ;;  %v1803_v0 = vmov 0.0   ;;  %vm1804_vm0 = vmmov 0   ;;  %vm297_vm1 = vcmask 1044480   ;;  %vm103_vm2 = vcmask 164864  }
  0x3f   :  { %1394 = vmatprep.subr.mxu0 %v1803_v0  ;;  %1400 = vmatprep.mubr.msk.f32.mxu0 %vm1804_vm0, %v1803_v0  ;;  %v255_v1 = vld [vmem:[%s2312_s3 + $0x10] sm:$0x1f]  ;;  %v254_v2 = vld [vmem:[%s2312_s3 + $0x8] sm:$0xff]  ;;  %v99_v3 = vld [vmem:[#allocation2] sm:$0x3]  ;;  %vm293_vm3 = vcmask 171008  }
  0x40   :  { %1403 = vmatprep.subr.mxu1 %v1803_v0  ;;  %1409 = vmatprep.mubr.msk.f32.mxu1 %vm1804_vm0, %v1803_v0  ;;  %v253_v4 = vld [vmem:[%s2312_s3] sm:$0xff]  ;;  %v104_v5 = vsel %vm103_vm2, %v99_v3, 0.0  ;;  %v1248_v45 = vld [vmem:[#allocation5] ss:$0 sm:$0xff]  ;;  %v1252_v48 = vld [vmem:[#allocation7] ss:$0 sm:$0xff] }
  0x41   :  { %1395 = vmatpush3.msk.msra.mxu0 %vm297_vm1, %v255_v1  ;;  %v105_v6 = vrot.slane %v104_v5, 4  ;;  %v101_v7 = vld [vmem:[#allocation2 + $0x4] sm:$0x3]  ;;  %v1250_v49 = vld [vmem:[#allocation5 + $0x2] ss:$0 sm:$0xff]  ;;  %v260_v56 = vld [vmem:[%s2312_s3 + $0x38] sm:$0xff] }
  0x42   :  { %1396 = vmatprep.subr.mxu0 %v1803_v0  ;;  %v118_v8 = vsel %vm103_vm2, %v101_v7, 0.0  ;;  %v261_v53 = vld [vmem:[%s2312_s3 + $0x40] sm:$0x1f]  ;;  %v1254_v55 = vld [vmem:[#allocation7 + $0x2] ss:$0 sm:$0xff]  ;;  %v259_v57 = vld [vmem:[%s2312_s3 + $0x30] sm:$0xff] }
  0x43   :  { %1397 = vmatpush3.msra.mxu0 %v254_v2  ;;  %v106_v9 = vadd.f32 %v105_v6, %v104_v5  ;;  %v119_v10 = vrot.slane %v118_v8, 4  ;;  %v1924_v59 = vld [vmem:[%s2314_s5 + $0x38] sm:$0xff]  ;;  %v1931_v60 = vld [vmem:[%s2314_s5 + $0x30] sm:$0xff]  ;;  %v1940_v61 = vld [vmem:[%s2314_s5 + $0x28] sm:$0xff]  ;;  %vm618_vm4 = vcmask 523264  }
  0x44   :  { %1398 = vmatprep.subr.mxu0 %v1803_v0  ;;  %v1947_v62 = vld [vmem:[%s2314_s5 + $0x20] sm:$0xff]  ;;  %v1954_v63 = vld [vmem:[%s2314_s5 + $0x18] sm:$0xff] }
  0x45   :  { %1399 = vmatpush3.msra.mxu0 %v253_v4  ;;  %v107_v11 = vrot.slane %v106_v9, 2  ;;  %v120_v12 = vadd.f32 %v119_v10, %v118_v8  ;;  %v100_v1 = vld [vmem:[#allocation2 + $0x2] sm:$0x3] }
  0x46   :  { %1412 = vmatprep.subr.mxu0 %v1803_v0  ;;  %v111_v2 = vsel %vm103_vm2, %v100_v1, 0.0 }
  0x47   :  { %v108_v13 = vadd.f32 %v107_v11, %v106_v9  ;;  %v121_v14 = vrot.slane %v120_v12, 2  ;;  %v112_v4 = vrot.slane %v111_v2, 4 }
  0x49   :  { %v109_v15 = vrot.slane %v108_v13, 1  ;;  %v122_v16 = vadd.f32 %v121_v14, %v120_v12  ;;  %v113_v5 = vadd.f32 %v112_v4, %v111_v2  ;;  %v102_v12 = vld [vmem:[#allocation2 + $0x6] sm:$0x3]  ;;  %v262_v2 = vld [vmem:[%s2312_s3 + $0x48] sm:$0xff] }
  0x4a   :  { %v125_v14 = vsel %vm103_vm2, %v102_v12, 0.0 }
  0x4b   :  { %v110_v17 = vadd.f32 %v109_v15, %v108_v13  ;;  %v123_v18 = vrot.slane %v122_v16, 1  ;;  %v114_v6 = vrot.slane %v113_v5, 2  ;;  %v126_v15 = vrot.slane %v125_v14, 4 }
  0x4d   :  { %v133_v19 = vmul.f32 0.5, %v110_v17  ;;  %v124_v20 = vadd.f32 %v123_v18, %v122_v16  ;;  %v127_v18 = vadd.f32 %v126_v15, %v125_v14  ;;  %v2053_v15 = vld [vmem:[%s2316_s7 + $0x78] sm:$0xff] }
  0x4f   :  { %v137_v21 = vsub.f32 %v99_v3, %v133_v19  ;;  %v135_v22 = vmul.f32 0.5, %v124_v20  ;;  %v1962_v3 = vld [vmem:[%s2314_s5 + $0x10] sm:$0xff]  ;;  %v128_v20 = vrot.slane %v127_v18, 2 }
  0x51   :  { %v141_v23 = vmul.f32 %v137_v21, %v137_v21  ;;  %v139_v24 = vsub.f32 %v101_v7, %v135_v22  ;;  %v115_v7 = vadd.f32 %v114_v6, %v113_v5  ;;  %v129_v22 = vadd.f32 %v128_v20, %v127_v18  ;;  %v1256_v5 = vld [vmem:[#allocation8] ss:$0 sm:$0xff]  ;;  %v2077_v18 = vld [vmem:[%s2316_s7 + $0x60] sm:$0xff] }
  0x52   :  { %v2091_v20 = vld [vmem:[%s2316_s7 + $0x50] sm:$0xff] }
  0x53   :  { %v145_v25 = vsel %vm103_vm2, %v141_v23, 0.0  ;;  %v143_v26 = vmul.f32 %v139_v24, %v139_v24  ;;  %v116_v8 = vrot.slane %v115_v7, 1 }
  0x54   :  { %v146_v27 = vrot.slane %v145_v25, 4 }
  0x55   :  { %v159_v28 = vsel %vm103_vm2, %v143_v26, 0.0  ;;  %v117_v9 = vadd.f32 %v116_v8, %v115_v7 }
  0x56   :  { %v147_v29 = vadd.f32 %v146_v27, %v145_v25  ;;  %v160_v30 = vrot.slane %v159_v28, 4 }
  0x57   :  { %v134_v10 = vmul.f32 0.5, %v117_v9 }
  0x58   :  { %v148_v31 = vrot.slane %v147_v29, 2  ;;  %v161_v32 = vadd.f32 %v160_v30, %v159_v28 }
  0x59   :  { %v138_v11 = vsub.f32 %v100_v1, %v134_v10  ;;  %v1255_v1 = vld [vmem:[#allocation7 + $0x3] ss:$0 sm:$0xff] }
  0x5a   :  { %v149_v33 = vadd.f32 %v148_v31, %v147_v29  ;;  %v162_v34 = vrot.slane %v161_v32, 2 }
  0x5b   :  { %v142_v13 = vmul.f32 %v138_v11, %v138_v11 }
  0x5c   :  { %v150_v35 = vrot.slane %v149_v33, 1  ;;  %v163_v36 = vadd.f32 %v162_v34, %v161_v32 }
  0x5d   :  { %v152_v16 = vsel %vm103_vm2, %v142_v13, 0.0 }
  0x5e   :  { %v151_v37 = vadd.f32 %v150_v35, %v149_v33  ;;  %v164_v38 = vrot.slane %v163_v36, 1  ;;  %v153_v17 = vrot.slane %v152_v16, 4 }
  0x60   :  { %v173_v39 = vmul.f32 0.5, %v151_v37  ;;  %v165_v40 = vadd.f32 %v164_v38, %v163_v36  ;;  %v154_v19 = vadd.f32 %v153_v17, %v152_v16  ;;  %v2061_v16 = vld [vmem:[%s2316_s7 + $0x70] sm:$0xff]  ;;  %v2070_v17 = vld [vmem:[%s2316_s7 + $0x68] sm:$0xff] }
  0x62   :  { %v177_v41 = vadd.f32 1e-05, %v173_v39  ;;  %v175_v42 = vmul.f32 0.5, %v165_v40 }
  0x64   :  { %1658 = vrsqrt.f32 %v177_v41  ;;  %v179_v43 = vadd.f32 1e-05, %v175_v42  ;;  %v258_v42 = vld [vmem:[%s2312_s3 + $0x28] sm:$0x1f] }
  0x65   :  { %1404 = vmatpush3.msk.msra.mxu1 %vm297_vm1, %v258_v42 }
  0x66   :  { %1660 = vrsqrt.f32 %v179_v43  ;;  %1405 = vmatprep.subr.mxu1 %v1803_v0 }
  0x71   :  { %v1659_v44 = vpop.eup %1658 }
  0x72   :  { %v185_v46 = vmul.f32 %v1659_v44, %v137_v21  ;;  %v155_v21 = vrot.slane %v154_v19, 2  ;;  %v1978_v44 = vld [vmem:[%s2314_s5 + $0x8] sm:$0xff] }
  0x73   :  { %v1661_v47 = vpop.eup %1660 }
  0x74   :  { %v217_v50 = vmul.f32 %v1248_v45, %v185_v46  ;;  %v187_v51 = vmul.f32 %v1661_v47, %v139_v24  ;;  %v156_v23 = vadd.f32 %v155_v21, %v154_v19  ;;  %v130_v24 = vrot.slane %v129_v22, 1  ;;  %v1249_v45 = vld [vmem:[#allocation5 + $0x1] ss:$0 sm:$0xff]  ;;  %v257_v47 = vld [vmem:[%s2312_s3 + $0x20] sm:$0xff]  ;;  %v2084_v19 = vld [vmem:[%s2316_s7 + $0x58] sm:$0xff] }
  0x75   :  { %1406 = vmatpush3.msra.mxu1 %v257_v47  ;;  %v2098_v21 = vld [vmem:[%s2316_s7 + $0x48] sm:$0xff] }
  0x76   :  { %v249_v52 = vadd.f32 %v1252_v48, %v217_v50  ;;  %v219_v54 = vmul.f32 %v1250_v49, %v187_v51  ;;  %v157_v25 = vrot.slane %v156_v23, 1  ;;  %v131_v26 = vadd.f32 %v130_v24, %v129_v22  ;;  %v1989_v49 = vld [vmem:[%s2314_s5] sm:$0xff]  ;;  %v1253_v50 = vld [vmem:[#allocation7 + $0x1] ss:$0 sm:$0xff]  ;;  %1407 = vmatprep.subr.mxu1 %v1803_v0  ;;  %v256_v51 = vld [vmem:[%s2312_s3 + $0x18] sm:$0xff] }
  0x77   :  { %1408 = vmatpush3.msra.mxu1 %v256_v51  ;;  %v2105_v22 = vld [vmem:[%s2316_s7 + $0x40] sm:$0xff]  ;;  %v2119_v24 = vld [vmem:[%s2316_s7 + $0x30] sm:$0xff] }
  0x78   :  { %1401 = vmatmul.mubr.msk.f32.vlgmr.msra.gmra.mxu0 %vm293_vm3, %v249_v52  ;;  %v251_v58 = vadd.f32 %v1254_v55, %v219_v54  ;;  %v158_v27 = vadd.f32 %v157_v25, %v156_v23  ;;  %v136_v28 = vmul.f32 0.5, %v131_v26  ;;  %1421 = vmatprep.subr.mxu1 %v1803_v0  ;;  %v264_v54 = vld [vmem:[%s2312_s3 + $0x58] sm:$0x1f]  ;;  %v2126_v25 = vld [vmem:[%s2316_s7 + $0x28] sm:$0xff]  ;;  %v2133_v26 = vld [vmem:[%s2316_s7 + $0x20] sm:$0xff] }
  0x79   :  { %1413 = vmatpush3.msk.msra.mxu0 %vm297_vm1, %v261_v53  ;;  %1418 = vmatprep.mubr.msk.f32.mxu0 %vm1804_vm0, %v1803_v0  ;;  %v2112_v23 = vld [vmem:[%s2316_s7 + $0x38] sm:$0xff] }
  0x7a   :  { %1414 = vmatprep.subr.mxu0 %v1803_v0  ;;  %v174_v29 = vmul.f32 0.5, %v158_v27  ;;  %v140_v30 = vsub.f32 %v102_v12, %v136_v28  ;;  %v1258_v12 = vld [vmem:[#allocation8 + $0x2] ss:$0 sm:$0xff]  ;;  %v2140_v27 = vld [vmem:[%s2316_s7 + $0x18] sm:$0xff] }
  0x7b   :  { %1415 = vmatpush3.msra.mxu0 %v260_v56  ;;  %v1251_v56 = vld [vmem:[#allocation5 + $0x3] ss:$0 sm:$0xff]  ;;  %v2147_v28 = vld [vmem:[%s2316_s7 + $0x10] sm:$0xff] }
  0x7c   :  { %1416 = vmatprep.subr.mxu0 %v1803_v0  ;;  %v178_v31 = vadd.f32 1e-05, %v174_v29  ;;  %v144_v32 = vmul.f32 %v140_v30, %v140_v30  ;;  %v2154_v29 = vld [vmem:[%s2316_s7 + $0x8] sm:$0xff] }
  0x7d   :  { %1417 = vmatpush3.msra.mxu0 %v259_v57  ;;  %v263_v57 = vld [vmem:[%s2312_s3 + $0x50] sm:$0xff] }
  0x7e   :  { %1419 = vmatmul.mubr.msk.f32.vlgmr.msra.gmra.mxu0 %vm293_vm3, %v251_v58  ;;  %1430 = vmatprep.subr.mxu0 %v1803_v0  ;;  %1662 = vrsqrt.f32 %v178_v31  ;;  %v166_v33 = vsel %vm103_vm2, %v144_v32, 0.0  ;;  %v1257_v31 = vld [vmem:[#allocation8 + $0x1] ss:$0 sm:$0xff] }
  0x7f   :  { %1431 = vmatpush3.msra.mxu0 %v1924_v59  ;;  %1446 = vmatprep.mubr.msk.f32.mxu0 %vm1804_vm0, %v1803_v0  ;;  %v167_v34 = vrot.slane %v166_v33, 4 }
  0x80   :  { %1432 = vmatprep.subr.mxu0 %v1803_v0 }
  0x81   :  { %1433 = vmatpush3.msra.mxu0 %v1931_v60  ;;  %v168_v35 = vadd.f32 %v167_v34, %v166_v33 }
  0x82   :  { %1434 = vmatprep.subr.mxu0 %v1803_v0 }
  0x83   :  { %1435 = vmatpush3.msra.mxu0 %v1940_v61  ;;  %v169_v36 = vrot.slane %v168_v35, 2 }
  0x84   :  { %1436 = vmatprep.subr.mxu0 %v1803_v0 }
  0x85   :  { %1437 = vmatpush3.msra.mxu0 %v1947_v62  ;;  %v170_v37 = vadd.f32 %v169_v36, %v168_v35 }
  0x86   :  { %1438 = vmatprep.subr.mxu0 %v1803_v0 }
  0x87   :  { %1439 = vmatpush3.msra.mxu0 %v1954_v63  ;;  %v171_v38 = vrot.slane %v170_v37, 1 }
  0x88   :  { %1440 = vmatprep.subr.mxu0 %v1803_v0 }
  0x89   :  { %1441 = vmatpush3.msra.mxu0 %v1962_v3  ;;  %v172_v39 = vadd.f32 %v171_v38, %v170_v37 }
  0x8a   :  { %1442 = vmatprep.subr.mxu0 %v1803_v0 }
  0x8b   :  { %v1663_v40 = vpop.eup %1662  ;;  %v176_v41 = vmul.f32 0.5, %v172_v39  ;;  %1443 = vmatpush3.msra.mxu0 %v1978_v44  ;;  %v2255_v39 = vld [vmem:[#allocation10] ss:$0 sm:$0xff] }
  0x8c   :  { %v186_v43 = vmul.f32 %v1663_v40, %v138_v11  ;;  %1444 = vmatprep.subr.mxu0 %v1803_v0  ;;  %v2260_v40 = vld [vmem:[%s2317_s8] ss:$0 sm:$0xff]  ;;  %s1805_s8 = smov [#allocation11]  }
  0x8d   :  { %v180_v46 = vadd.f32 1e-05, %v176_v41  ;;  %1445 = vmatpush3.msra.mxu0 %v1989_v49  ;;  %s1234_s14 = sshll.u32 %s1805_s8, 4  ;;  %s1235_s14 = int_to_ptr.vmem [resolvable:$true] %s1234_s14 }
  0x8e   :  { %v218_v48 = vmul.f32 %v1249_v45, %v186_v43  ;;  %1468 = vmatprep.subr.mxu0 %v1803_v0  ;;  %s1766_s15 = scalar_lea.vmem %s1235_s14, 128  ;;  %p1771_p12 = scmp.lt.s32.totalorder %s1235_s14, %s1235_s14 }
  0x8f   :  { %1664 = vrsqrt.f32 %v180_v46  ;;  %p1767_p11 = scmp.ne.s32.totalorder %s1235_s14, %s1766_s15  ;;  %p1772_p13 = scmp.lt.s32.totalorder %s1766_s15, %s1766_s15 }
  0x90   :  { %v250_v52 = vadd.f32 %v1253_v50, %v218_v48 }
  0x91   :  { %p1773_p0 = por %p1772_p13, %p1771_p12 }
  0x92   :  { %1410 = vmatmul.mubr.msk.f32.vlgmr.msra.gmra.mxu1 %vm293_vm3, %v250_v52 }
  0x93   :  { %1427 = vmatprep.mubr.msk.f32.mxu1 %vm1804_vm0, %v1803_v0  ;;  %1422 = vmatpush3.msk.msra.mxu1 %vm297_vm1, %v264_v54  ;;  %p1774_p1 = pnand %p1773_p0, %p1767_p11 }
  0x94   :  { %1423 = vmatprep.subr.mxu1 %v1803_v0 }
  0x95   :  { %1424 = vmatpush3.msra.mxu1 %v263_v57 }
  0x96   :  { %1425 = vmatprep.subr.mxu1 %v1803_v0 }
  0x97   :  { %1426 = vmatpush3.msra.mxu1 %v262_v2 }
  0x98   :  { %1449 = vmatprep.subr.mxu1 %v1803_v0 }
  0x9c   :  { %v1665_v53 = vpop.eup %1664 }
  0x9d   :  { %v188_v55 = vmul.f32 %v1665_v53, %v140_v30  ;;  %v2161_v30 = vld [vmem:[%s2316_s7] sm:$0xff] }
  0x9f   :  { %v220_v58 = vmul.f32 %v1251_v56, %v188_v55 }
  0xa1   :  { %v252_v4 = vadd.f32 %v1255_v1, %v220_v58 }
  0xa3   :  { %1428 = vmatmul.mubr.msk.f32.vlgmr.msra.gmra.mxu1 %vm293_vm3, %v252_v4 }
  0xa4   :  { %1450 = vmatpush3.msra.mxu1 %v1924_v59  ;;  %1465 = vmatprep.mubr.msk.f32.mxu1 %vm1804_vm0, %v1803_v0 }
  0xa5   :  { %1451 = vmatprep.subr.mxu1 %v1803_v0 }
  0xa6   :  { %1452 = vmatpush3.msra.mxu1 %v1931_v60 }
  0xa7   :  { %1453 = vmatprep.subr.mxu1 %v1803_v0 }
  0xa8   :  { %1454 = vmatpush3.msra.mxu1 %v1940_v61 }
  0xa9   :  { %1455 = vmatprep.subr.mxu1 %v1803_v0 }
  0xaa   :  { %1456 = vmatpush3.msra.mxu1 %v1947_v62 }
  0xab   :  { %1457 = vmatprep.subr.mxu1 %v1803_v0 }
  0xac   :  { %1458 = vmatpush3.msra.mxu1 %v1954_v63 }
  0xad   :  { %1459 = vmatprep.subr.mxu1 %v1803_v0 }
  0xae   :  { %1460 = vmatpush3.msra.mxu1 %v1962_v3 }
  0xaf   :  { %1461 = vmatprep.subr.mxu1 %v1803_v0 }
  0xb0   :  { %1462 = vmatpush3.msra.mxu1 %v1978_v44 }
  0xb1   :  { %1463 = vmatprep.subr.mxu1 %v1803_v0 }
  0xb2   :  { %1464 = vmatpush3.msra.mxu1 %v1989_v49 }
  0xb3   :  { %1487 = vmatprep.subr.mxu1 %v1803_v0 }
 0x138   :  { %v367_v6 = vpop.f32.mrf.mxu0 }
 0x139   :  { %v368_v7 = vadd.f32 %v1256_v5, %v367_v6 }
 0x13a   :  { %v1402_v8 = vpop.f32.mrf.mxu0 }
 0x13b   :  { %v599_v9 = vmax.f32 %v368_v7, 0.0 }
 0x13d   :  { %1447 = vmatmul.mubr.msk.f32.vlgmr.msra.gmra.mxu0 %vm618_vm4, %v599_v9 }
 0x13e   :  { %1469 = vmatpush3.msra.mxu0 %v1924_v59  ;;  %v519_v10 = vpop.f32.mrf.mxu0  ;;  %1484 = vmatprep.mubr.msk.f32.mxu0 %vm1804_vm0, %v1803_v0 }
 0x13f   :  { %1470 = vmatprep.subr.mxu0 %v1803_v0  ;;  %v520_v13 = vadd.f32 %v1258_v12, %v519_v10 }
 0x140   :  { %1471 = vmatpush3.msra.mxu0 %v1931_v60  ;;  %v1420_v11 = vpop.f32.mrf.mxu0 }
 0x141   :  { %1472 = vmatprep.subr.mxu0 %v1803_v0  ;;  %v601_v14 = vmax.f32 %v520_v13, 0.0 }
 0x142   :  { %1473 = vmatpush3.msra.mxu0 %v1940_v61 }
 0x143   :  { %1474 = vmatprep.subr.mxu0 %v1803_v0 }
 0x144   :  { %1475 = vmatpush3.msra.mxu0 %v1947_v62 }
 0x145   :  { %1476 = vmatprep.subr.mxu0 %v1803_v0 }
 0x146   :  { %1477 = vmatpush3.msra.mxu0 %v1954_v63 }
 0x147   :  { %1478 = vmatprep.subr.mxu0 %v1803_v0 }
 0x148   :  { %1479 = vmatpush3.msra.mxu0 %v1962_v3 }
 0x149   :  { %1480 = vmatprep.subr.mxu0 %v1803_v0 }
 0x14a   :  { %1481 = vmatpush3.msra.mxu0 %v1978_v44 }
 0x14b   :  { %1482 = vmatprep.subr.mxu0 %v1803_v0 }
 0x14c   :  { %1483 = vmatpush3.msra.mxu0 %v1989_v49 }
 0x14d   :  { %1485 = vmatmul.mubr.msk.f32.vlgmr.msra.gmra.mxu0 %vm618_vm4, %v601_v14  ;;  %1506 = vmatprep.subr.mxu0 %v1803_v0 }
 0x14e   :  { %1507 = vmatpush3.msra.mxu0 %v2053_v15  ;;  %1538 = vmatprep.mubr.msk.f32.mxu0 %vm1804_vm0, %v1803_v0 }
 0x14f   :  { %1508 = vmatprep.subr.mxu0 %v1803_v0 }
 0x150   :  { %1509 = vmatpush3.msra.mxu0 %v2061_v16 }
 0x151   :  { %1510 = vmatprep.subr.mxu0 %v1803_v0 }
 0x152   :  { %1511 = vmatpush3.msra.mxu0 %v2070_v17  ;;  %v443_v32 = vpop.f32.mrf.mxu1 }
 0x153   :  { %1512 = vmatprep.subr.mxu0 %v1803_v0  ;;  %v444_v33 = vadd.f32 %v1257_v31, %v443_v32 }
 0x154   :  { %1513 = vmatpush3.msra.mxu0 %v2077_v18  ;;  %v1411_v34 = vpop.f32.mrf.mxu1 }
 0x155   :  { %1514 = vmatprep.subr.mxu0 %v1803_v0  ;;  %v600_v35 = vmax.f32 %v444_v33, 0.0 }
 0x156   :  { %1515 = vmatpush3.msra.mxu0 %v2084_v19 }
 0x157   :  { %1516 = vmatprep.subr.mxu0 %v1803_v0  ;;  %1466 = vmatmul.mubr.msk.f32.vlgmr.msra.gmra.mxu1 %vm618_vm4, %v600_v35 }
 0x158   :  { %1517 = vmatpush3.msra.mxu0 %v2091_v20  ;;  %1488 = vmatpush3.msra.mxu1 %v1924_v59  ;;  %v1259_v59 = vld [vmem:[#allocation8 + $0x3] ss:$0 sm:$0xff] }
 0x159   :  { %1518 = vmatprep.subr.mxu0 %v1803_v0  ;;  %1503 = vmatprep.mubr.msk.f32.mxu1 %vm1804_vm0, %v1803_v0 }
 0x15a   :  { %1519 = vmatpush3.msra.mxu0 %v2098_v21  ;;  %1489 = vmatprep.subr.mxu1 %v1803_v0 }
 0x15b   :  { %1520 = vmatprep.subr.mxu0 %v1803_v0  ;;  %1490 = vmatpush3.msra.mxu1 %v1931_v60 }
 0x15c   :  { %1521 = vmatpush3.msra.mxu0 %v2105_v22  ;;  %1491 = vmatprep.subr.mxu1 %v1803_v0 }
 0x15d   :  { %1522 = vmatprep.subr.mxu0 %v1803_v0  ;;  %1492 = vmatpush3.msra.mxu1 %v1940_v61 }
 0x15e   :  { %1523 = vmatpush3.msra.mxu0 %v2112_v23  ;;  %1493 = vmatprep.subr.mxu1 %v1803_v0 }
 0x15f   :  { %1524 = vmatprep.subr.mxu0 %v1803_v0  ;;  %1494 = vmatpush3.msra.mxu1 %v1947_v62 }
 0x160   :  { %1525 = vmatpush3.msra.mxu0 %v2119_v24  ;;  %1495 = vmatprep.subr.mxu1 %v1803_v0 }
 0x161   :  { %1526 = vmatprep.subr.mxu0 %v1803_v0  ;;  %1496 = vmatpush3.msra.mxu1 %v1954_v63 }
 0x162   :  { %1527 = vmatpush3.msra.mxu0 %v2126_v25  ;;  %1497 = vmatprep.subr.mxu1 %v1803_v0 }
 0x163   :  { %1528 = vmatprep.subr.mxu0 %v1803_v0  ;;  %1498 = vmatpush3.msra.mxu1 %v1962_v3  ;;  %v595_v60 = vpop.f32.mrf.mxu1 }
 0x164   :  { %1529 = vmatpush3.msra.mxu0 %v2133_v26  ;;  %1499 = vmatprep.subr.mxu1 %v1803_v0  ;;  %v596_v61 = vadd.f32 %v1259_v59, %v595_v60 }
 0x165   :  { %1530 = vmatprep.subr.mxu0 %v1803_v0  ;;  %1500 = vmatpush3.msra.mxu1 %v1978_v44  ;;  %v1429_v62 = vpop.f32.mrf.mxu1 }
 0x166   :  { %1531 = vmatpush3.msra.mxu0 %v2140_v27  ;;  %1501 = vmatprep.subr.mxu1 %v1803_v0  ;;  %v602_v63 = vmax.f32 %v596_v61, 0.0 }
 0x167   :  { %1532 = vmatprep.subr.mxu0 %v1803_v0  ;;  %1502 = vmatpush3.msra.mxu1 %v1989_v49 }
 0x168   :  { %1533 = vmatpush3.msra.mxu0 %v2147_v28  ;;  %1541 = vmatprep.subr.mxu1 %v1803_v0 }
 0x169   :  { %1534 = vmatprep.subr.mxu0 %v1803_v0  ;;  %1504 = vmatmul.mubr.msk.f32.vlgmr.msra.gmra.mxu1 %vm618_vm4, %v602_v63 }
 0x16a   :  { %1535 = vmatpush3.msra.mxu0 %v2154_v29  ;;  %1542 = vmatpush3.msra.mxu1 %v2053_v15 }
 0x16b   :  { %1536 = vmatprep.subr.mxu0 %v1803_v0  ;;  %1573 = vmatprep.mubr.msk.f32.mxu1 %vm1804_vm0, %v1803_v0 }
 0x16c   :  { %1537 = vmatpush3.msra.mxu0 %v2161_v30  ;;  %1543 = vmatprep.subr.mxu1 %v1803_v0 }
 0x16d   :  { %1539 = vmatmul.mubr.f32.vlgmr.msra.gmra.mxu0 %v1803_v0  ;;  %1576 = vmatprep.subr.mxu0 %v1803_v0 }
 0x16e   :  { %1577 = vmatpush3.msra.mxu0 %v2053_v15  ;;  %1608 = vmatprep.mubr.msk.f32.mxu0 %vm1804_vm0, %v1803_v0 }
 0x16f   :  { %1578 = vmatprep.subr.mxu0 %v1803_v0  ;;  %1544 = vmatpush3.msra.mxu1 %v2061_v16 }
 0x170   :  { %1579 = vmatpush3.msra.mxu0 %v2061_v16  ;;  %1545 = vmatprep.subr.mxu1 %v1803_v0 }
 0x171   :  { %1580 = vmatprep.subr.mxu0 %v1803_v0  ;;  %1546 = vmatpush3.msra.mxu1 %v2070_v17 }
 0x172   :  { %1581 = vmatpush3.msra.mxu0 %v2070_v17  ;;  %1547 = vmatprep.subr.mxu1 %v1803_v0 }
 0x173   :  { %1582 = vmatprep.subr.mxu0 %v1803_v0  ;;  %1548 = vmatpush3.msra.mxu1 %v2077_v18 }
 0x174   :  { %1583 = vmatpush3.msra.mxu0 %v2077_v18  ;;  %1549 = vmatprep.subr.mxu1 %v1803_v0 }
 0x175   :  { %1584 = vmatprep.subr.mxu0 %v1803_v0  ;;  %1550 = vmatpush3.msra.mxu1 %v2084_v19 }
 0x176   :  { %1585 = vmatpush3.msra.mxu0 %v2084_v19  ;;  %1551 = vmatprep.subr.mxu1 %v1803_v0 }
 0x177   :  { %1586 = vmatprep.subr.mxu0 %v1803_v0  ;;  %1552 = vmatpush3.msra.mxu1 %v2091_v20 }
 0x178   :  { %1587 = vmatpush3.msra.mxu0 %v2091_v20  ;;  %1553 = vmatprep.subr.mxu1 %v1803_v0 }
 0x179   :  { %1588 = vmatprep.subr.mxu0 %v1803_v0  ;;  %1554 = vmatpush3.msra.mxu1 %v2098_v21 }
 0x17a   :  { %1589 = vmatpush3.msra.mxu0 %v2098_v21  ;;  %1555 = vmatprep.subr.mxu1 %v1803_v0 }
 0x17b   :  { %1590 = vmatprep.subr.mxu0 %v1803_v0  ;;  %1556 = vmatpush3.msra.mxu1 %v2105_v22 }
 0x17c   :  { %1591 = vmatpush3.msra.mxu0 %v2105_v22  ;;  %1557 = vmatprep.subr.mxu1 %v1803_v0 }
 0x17d   :  { %1592 = vmatprep.subr.mxu0 %v1803_v0  ;;  %1558 = vmatpush3.msra.mxu1 %v2112_v23 }
 0x17e   :  { %1593 = vmatpush3.msra.mxu0 %v2112_v23  ;;  %1559 = vmatprep.subr.mxu1 %v1803_v0 }
 0x17f   :  { %1594 = vmatprep.subr.mxu0 %v1803_v0  ;;  %1560 = vmatpush3.msra.mxu1 %v2119_v24 }
 0x180   :  { %1595 = vmatpush3.msra.mxu0 %v2119_v24  ;;  %1561 = vmatprep.subr.mxu1 %v1803_v0 }
 0x181   :  { %1596 = vmatprep.subr.mxu0 %v1803_v0  ;;  %1562 = vmatpush3.msra.mxu1 %v2126_v25 }
 0x182   :  { %1597 = vmatpush3.msra.mxu0 %v2126_v25  ;;  %1563 = vmatprep.subr.mxu1 %v1803_v0 }
 0x183   :  { %1598 = vmatprep.subr.mxu0 %v1803_v0  ;;  %1564 = vmatpush3.msra.mxu1 %v2133_v26 }
 0x184   :  { %1599 = vmatpush3.msra.mxu0 %v2133_v26  ;;  %1565 = vmatprep.subr.mxu1 %v1803_v0 }
 0x185   :  { %1600 = vmatprep.subr.mxu0 %v1803_v0  ;;  %1566 = vmatpush3.msra.mxu1 %v2140_v27 }
 0x186   :  { %1601 = vmatpush3.msra.mxu0 %v2140_v27  ;;  %1567 = vmatprep.subr.mxu1 %v1803_v0 }
 0x187   :  { %1602 = vmatprep.subr.mxu0 %v1803_v0  ;;  %1568 = vmatpush3.msra.mxu1 %v2147_v28 }
 0x188   :  { %1603 = vmatpush3.msra.mxu0 %v2147_v28  ;;  %1569 = vmatprep.subr.mxu1 %v1803_v0 }
 0x189   :  { %1604 = vmatprep.subr.mxu0 %v1803_v0  ;;  %1570 = vmatpush3.msra.mxu1 %v2154_v29 }
 0x18a   :  { %1605 = vmatpush3.msra.mxu0 %v2154_v29  ;;  %1571 = vmatprep.subr.mxu1 %v1803_v0 }
 0x18b   :  { %1606 = vmatprep.subr.mxu0 %v1803_v0  ;;  %1572 = vmatpush3.msra.mxu1 %v2161_v30 }
 0x18c   :  { %1607 = vmatpush3.msra.mxu0 %v2161_v30  ;;  %1611 = vmatprep.subr.mxu1 %v1803_v0 }
 0x1fd   :  { %v688_v3 = vpop.f32.mrf.mxu0 }
 0x1fe   :  { %v689_v42 = vadd.f32 %v2255_v39, %v688_v3 }
 0x1ff   :  { %v1448_v36 = vpop.f32.mrf.mxu0 }
 0x20d   :  { %v834_v37 = vpop.f32.mrf.mxu0 }
 0x20e   :  { %v835_v58 = vadd.f32 %v2255_v39, %v834_v37 }
 0x20f   :  { %v1486_v38 = vpop.f32.mrf.mxu0 }
 0x217   :  { %v761_v47 = vpop.f32.mrf.mxu1 }
 0x218   :  { %v762_v52 = vadd.f32 %v2255_v39, %v761_v47 }
 0x219   :  { %v1467_v48 = vpop.f32.mrf.mxu1 }
 0x229   :  { %v907_v49 = vpop.f32.mrf.mxu1 }
 0x22a   :  { %v908_v6 = vadd.f32 %v2255_v39, %v907_v49 }
 0x22b   :  { %v1505_v50 = vpop.f32.mrf.mxu1 }
 0x22d   :  { %v1000_v41 = vpop.f32.mrf.mxu0 }
 0x22e   :  { %v1001_v43 = vadd.f32 %v2260_v40, %v1000_v41 }
 0x22f   :  { %v1540_v44 = vpop.f32.mrf.mxu0 }
 0x230   :  { %v1004_v45 = vadd.f32 %v1001_v43, %v689_v42 }
 0x232   :  { %v1005_v46 = vmax.f32 %v1004_v45, 0.0 }
 0x234   :  { %1006 = vst [vmem:[#allocation11] sm:$0x3] %v1005_v46  ;;  %1574 = vmatmul.mubr.f32.vlgmr.msra.gmra.mxu1 %v1005_v46 }
 0x235   :  { %1612 = vmatpush3.msra.mxu1 %v2053_v15  ;;  %1643 = vmatprep.mubr.msk.f32.mxu1 %vm1804_vm0, %v1803_v0 }
 0x236   :  { %1613 = vmatprep.subr.mxu1 %v1803_v0 }
 0x237   :  { %1614 = vmatpush3.msra.mxu1 %v2061_v16 }
 0x238   :  { %1615 = vmatprep.subr.mxu1 %v1803_v0 }
 0x239   :  { %1616 = vmatpush3.msra.mxu1 %v2070_v17 }
 0x23a   :  { %1617 = vmatprep.subr.mxu1 %v1803_v0 }
 0x23b   :  { %1618 = vmatpush3.msra.mxu1 %v2077_v18 }
 0x23c   :  { %1619 = vmatprep.subr.mxu1 %v1803_v0 }
 0x23d   :  { %1620 = vmatpush3.msra.mxu1 %v2084_v19 }
 0x23e   :  { %1621 = vmatprep.subr.mxu1 %v1803_v0 }
 0x23f   :  { %1622 = vmatpush3.msra.mxu1 %v2091_v20 }
 0x240   :  { %1623 = vmatprep.subr.mxu1 %v1803_v0 }
 0x241   :  { %1624 = vmatpush3.msra.mxu1 %v2098_v21 }
 0x242   :  { %1625 = vmatprep.subr.mxu1 %v1803_v0 }
 0x243   :  { %1626 = vmatpush3.msra.mxu1 %v2105_v22 }
 0x244   :  { %1627 = vmatprep.subr.mxu1 %v1803_v0 }
 0x245   :  { %1628 = vmatpush3.msra.mxu1 %v2112_v23 }
 0x246   :  { %1629 = vmatprep.subr.mxu1 %v1803_v0 }
 0x247   :  { %1630 = vmatpush3.msra.mxu1 %v2119_v24 }
 0x248   :  { %1631 = vmatprep.subr.mxu1 %v1803_v0 }
 0x249   :  { %1632 = vmatpush3.msra.mxu1 %v2126_v25 }
 0x24a   :  { %1633 = vmatprep.subr.mxu1 %v1803_v0 }
 0x24b   :  { %1634 = vmatpush3.msra.mxu1 %v2133_v26 }
 0x24c   :  { %1635 = vmatprep.subr.mxu1 %v1803_v0 }
 0x24d   :  { %1636 = vmatpush3.msra.mxu1 %v2140_v27 }
 0x24e   :  { %1637 = vmatprep.subr.mxu1 %v1803_v0 }
 0x24f   :  { %1638 = vmatpush3.msra.mxu1 %v2147_v28 }
 0x250   :  { %1639 = vmatprep.subr.mxu1 %v1803_v0 }
 0x251   :  { %1640 = vmatpush3.msra.mxu1 %v2154_v29 }
 0x252   :  { %1641 = vmatprep.subr.mxu1 %v1803_v0 }
 0x253   :  { %1642 = vmatpush3.msra.mxu1 %v2161_v30 }
 0x2f4   :  { %v1073_v51 = vpop.f32.mrf.mxu1 }
 0x2f5   :  { %v1074_v53 = vadd.f32 %v2260_v40, %v1073_v51 }
 0x2f6   :  { %v1575_v54 = vpop.f32.mrf.mxu1 }
 0x2f7   :  { %v1077_v55 = vadd.f32 %v1074_v53, %v762_v52 }
 0x2f9   :  { %v1078_v56 = vmax.f32 %v1077_v55, 0.0 }
 0x2fb   :  { %1080 = vst [vmem:[#allocation11 + $0x2] sm:$0x3] %v1078_v56  ;;  %1609 = vmatmul.mubr.f32.vlgmr.msra.gmra.mxu0 %v1078_v56 }
 0x3bb   :  { %v1147_v57 = vpop.f32.mrf.mxu0 }
 0x3bc   :  { %v1148_v1 = vadd.f32 %v2260_v40, %v1147_v57 }
 0x3bd   :  { %v1610_v0 = vpop.f32.mrf.mxu0 }
 0x3be   :  { %v1151_v2 = vadd.f32 %v1148_v1, %v835_v58 }
 0x3c0   :  { %v1152_v4 = vmax.f32 %v1151_v2, 0.0 }
 0x3c2   :  { %1154 = vst [vmem:[#allocation11 + $0x4] sm:$0x3] %v1152_v4  ;;  %1644 = vmatmul.mubr.f32.vlgmr.msra.gmra.mxu1 %v1152_v4 }
 0x482   :  { %v1221_v5 = vpop.f32.mrf.mxu1 }
 0x483   :  { %v1222_v7 = vadd.f32 %v2260_v40, %v1221_v5 }
 0x484   :  { %v1645_v8 = vpop.f32.mrf.mxu1 }
 0x485   :  { %v1225_v9 = vadd.f32 %v1222_v7, %v908_v6 }
 0x487   :  { %v1226_v10 = vmax.f32 %v1225_v9, 0.0 }
 0x489   :  { %1228 = vst [vmem:[#allocation11 + $0x6] sm:$0x3] %v1226_v10 }
 0x48a   :  { %1777 = shalt.err (!%p1774_p1)
}
 0x48b   :  { %1240 = dma.vmem_to_hbm [thread:$0]  %s1235_s14, 128, %s2318_s9, [#allocation4], %s1799_s23, %s1799_s23, %s1800_s24  }
 0x48c   :  { %1792 = dma.done.wait [#allocation4], 128  }
 0x48d   :  { %1793 = vsyncadd [#allocation4], 4294967168 }
 0x48e   :  { %1244 = vsyncpa [#allocation3], 1 }
 0x48f   :  { %1245 = vsyncpa [#allocation6], 1 }
 0x490   :  { %1246 = vsyncpa [#allocation9], 1 }
 0x491   :  { %1247 = vsyncpa [#allocation4], 1 }

</bundles_post_ra>
